<compile_context>
chip_gen: v7x
topology: tpu7x:2x2x1
jax: 0.10.0
libtpu: 0.0.40
codegen_flags: <defaults>
</compile_context>

<pallas_src>
import functools

import jax
import jax.numpy as jnp
from jax.experimental import pallas as pl
from jax.experimental.pallas import tpu as pltpu


def _round_up(x, m):
    return ((x + m - 1) // m) * m


_INPUT_VMEM_BUDGET = 16 * 1024 * 1024   # double-buffered logits tiles (2 x 8 MiB)
_VMEM_LIMIT_BYTES = 40 * 1024 * 1024    # > v5e 16 MiB scoped default, < v7x 64 MiB


def _choose_tiles(n, c, itemsize):
    """Dtype-aware (TILE_N, TILE_C) so 2 x (logits tile) ~= 16 MiB."""
    max_tile_c = 4096 if itemsize <= 2 else 2048   # lane-aligned class-tile caps
    max_tile_n = 1024
    tile_c = c if c <= max_tile_c else max_tile_c  # full-C block or multiple of 128
    rows = _INPUT_VMEM_BUDGET // (2 * tile_c * itemsize)
    tile_n = max(8, min(max_tile_n, (rows // 8) * 8))
    tile_n = min(tile_n, _round_up(n, 8))
    # v7x has 2 TensorCores: make sure the "parallel" batch axis has >= 2 tiles.
    if n > 8 and -(-n // tile_n) < 2:
        tile_n = max(8, _round_up(-(-n // 2), 8))
    return tile_n, tile_c


def _ce_kernel(logits_ref, picked_ref, partial_ref, m_sc, s_sc, *,
               n_rows, n_classes, tile_n, tile_c):
    # logits_ref : VMEM [tile_n, tile_c]  (bf16 or f32, cast below)
    # picked_ref : VMEM [tile_n, 1] f32   (label logit, gathered in wrapper)
    # partial_ref: VMEM [1, 8, 128] f32   (per-batch-tile partial loss sum)
    # m_sc/s_sc  : VMEM [tile_n, 1] f32 scratch (running max / running sum-exp)
    i = pl.program_id(0)          # batch-tile index ("parallel")
    k = pl.program_id(1)          # class-tile index ("arbitrary", reduction, last)
    k_last = pl.num_programs(1) - 1

    @pl.when(k == 0)
    def _init():
        m_sc[...] = jnp.full_like(m_sc, -jnp.inf)
        s_sc[...] = jnp.zeros_like(s_sc)

    if n_classes % tile_c != 0:
        # Ragged last class tile only: neutralize padded columns in-place so
        # the steady-state tiles pay no iota/compare/select at all.
        @pl.when(k == k_last)
        def _mask_tail():
            col = (jax.lax.broadcasted_iota(jnp.int32, (tile_n, tile_c), 1)
                   + k * tile_c)
            logits_ref[...] = jnp.where(
                col < n_classes, logits_ref[...],
                jnp.asarray(-jnp.inf, dtype=logits_ref.dtype))

    x = logits_ref[...].astype(jnp.float32)                  # [tile_n, tile_c]

    # Online logsumexp update over the class axis.
    m_new = jnp.maximum(m_sc[...], jnp.max(x, axis=-1, keepdims=True))  # [tile_n, 1]
    alpha = jnp.exp(m_sc[...] - m_new)
    s_sc[...] = alpha * s_sc[...] + jnp.sum(jnp.exp(x - m_new), axis=-1, keepdims=True)
    m_sc[...] = m_new

    @pl.when(k == k_last)
    def _finalize():
        lse = jnp.log(s_sc[...]) + m_sc[...]                 # [tile_n, 1]
        per_example = lse - picked_ref[...]                  # [tile_n, 1]
        if n_rows % tile_n != 0:
            # Ragged last batch tile: drop padded rows from the partial sum.
            row = jax.lax.broadcasted_iota(jnp.int32, (tile_n, 1), 0) + i * tile_n
            per_example = jnp.where(row < n_rows, per_example, 0.0)
        partial_ref[...] = jnp.broadcast_to(jnp.sum(per_example), partial_ref.shape)


def cross_entropy_loss(logits, labels):
    """Mean softmax cross entropy; matches F.cross_entropy(logits, labels)."""
    n, c = logits.shape
    tile_n, tile_c = _choose_tiles(n, c, jnp.dtype(logits.dtype).itemsize)
    grid = (pl.cdiv(n, tile_n), pl.cdiv(c, tile_c))

    labels2d = labels.astype(jnp.int32).reshape(n, 1)
    # Gather the label logit outside the kernel (reads only N elements).
    picked = jnp.take_along_axis(logits, labels2d, axis=1).astype(jnp.float32)

    kernel = functools.partial(
        _ce_kernel, n_rows=n, n_classes=c, tile_n=tile_n, tile_c=tile_c)

    partials = pl.pallas_call(
        kernel,
        out_shape=jax.ShapeDtypeStruct((grid[0], 8, 128), jnp.float32),
        grid=grid,
        in_specs=[
            pl.BlockSpec((tile_n, tile_c), lambda i, k: (i, k)),   # logits (as-is dtype)
            pl.BlockSpec((tile_n, 1), lambda i, k: (i, 0)),        # picked label logit
        ],
        out_specs=pl.BlockSpec((1, 8, 128), lambda i, k: (i, 0, 0)),
        scratch_shapes=[
            pltpu.VMEM((tile_n, 1), jnp.float32),   # running max
            pltpu.VMEM((tile_n, 1), jnp.float32),   # running sum-exp
        ],
        compiler_params=pltpu.CompilerParams(
            dimension_semantics=("parallel", "arbitrary"),
            vmem_limit_bytes=_VMEM_LIMIT_BYTES,
        ),
    )(logits, picked)

    # Finalize: reduce per-tile partial sums and apply the mean here so
    # remainder tiles are weighted correctly.
    return jnp.sum(partials[:, 0, 0]) / jnp.float32(n)


def cross_entropy_module_forward(output, batch):
    """Mirror of CrossEntropyLoss.forward: {} if no labels, else {'ce': loss}."""
    if "y" not in batch:
        return {}
    labels = batch["y"]
    logits = output["logits"] if isinstance(output, dict) else output
    # TODO(synk): ignore_index / class weights / label smoothing not implemented
    # (the reference module uses default F.cross_entropy semantics only).
    return {"ce": cross_entropy_loss(logits, labels)}


def _ref_loss(logits, labels):
    lg = logits.astype(jnp.float32)
    picked = jnp.take_along_axis(lg, labels.astype(jnp.int32)[:, None], axis=1)[:, 0]
    return jnp.mean(jax.nn.logsumexp(lg, axis=-1) - picked)


if __name__ == "__main__":
    key = jax.random.PRNGKey(0)
    k1, k2, k3, k4, k5, k6 = jax.random.split(key, 6)

    # 1) Small, single-tile case (module-sized example: batch=8, classes=32).
    N, C = 8, 32
    logits = jax.random.normal(k1, (N, C), dtype=jnp.float32)
    labels = jax.random.randint(k2, (N,), 0, C, dtype=jnp.int32)
    out = cross_entropy_module_forward({"logits": logits}, {"y": labels})
    loss = jax.block_until_ready(out["ce"])
    assert jnp.allclose(loss, _ref_loss(logits, labels), atol=1e-5, rtol=1e-5), (
        loss, _ref_loss(logits, labels))

    # 2) Multi-tile f32: ragged class tail (2200 % 2048 != 0), 2 batch tiles
    #    with a ragged last batch tile (20 % 16 != 0).
    N2, C2 = 20, 2200
    logits2 = jax.random.normal(k3, (N2, C2), dtype=jnp.float32)
    labels2 = jax.random.randint(k4, (N2,), 0, C2, dtype=jnp.int32)
    loss2 = jax.block_until_ready(cross_entropy_loss(logits2, labels2))
    assert jnp.allclose(loss2, _ref_loss(logits2, labels2), atol=1e-4, rtol=1e-4), (
        loss2, _ref_loss(logits2, labels2))

    # 3) bf16 logits streamed as-is, ragged class tail at the 4096-wide tile.
    N3, C3 = 16, 4500
    logits3 = jax.random.normal(k5, (N3, C3), dtype=jnp.float32).astype(jnp.bfloat16)
    labels3 = jax.random.randint(k6, (N3,), 0, C3, dtype=jnp.int32)
    loss3 = jax.block_until_ready(cross_entropy_loss(logits3, labels3))
    assert jnp.allclose(loss3, _ref_loss(logits3, labels3), atol=1e-3, rtol=1e-3), (
        loss3, _ref_loss(logits3, labels3))

    # Exercise the "no labels" branch of the module forward.
    assert cross_entropy_module_forward({"logits": logits}, {}) == {}

    print("KERNEL_OK")
</pallas_src>

<mosaic_0001>
module attributes {stable_mosaic.version = 11 : i64} {
  func.func @_ce_kernel(%arg0: i32, %arg1: i32, %arg2: memref<8x32xf32, #tpu.memory_space<vmem>>, %arg3: memref<8x1xf32, #tpu.memory_space<vmem>>, %arg4: memref<1x8x128xf32, #tpu.memory_space<vmem>>, %arg5: memref<8x1xf32, #tpu.memory_space<vmem>>, %arg6: memref<8x1xf32, #tpu.memory_space<vmem>>) attributes {dimension_semantics = [#tpu.dimension_semantics<parallel>, #tpu.dimension_semantics<arbitrary>], iteration_bounds = array<i64: 1, 1>, scalar_prefetch = 0 : i64, scratch_operands = 2 : i64, tpu.core_type = #tpu.core_type<tc>, window_params = [{transform_indices = @transform_0, window_bounds = array<i64: 8, 32>}, {transform_indices = @transform_1, window_bounds = array<i64: 8, 1>}, {transform_indices = @transform_2, window_bounds = array<i64: 1, 8, 128>}]} {
    %c0_i32 = arith.constant 0 : i32
    %0 = arith.cmpi eq, %arg1, %c0_i32 : i32
    %1 = arith.extui %0 : i1 to i32
    %c0_i32_0 = arith.constant 0 : i32
    %2 = arith.cmpi ne, %1, %c0_i32_0 : i32
    scf.if %2 {
      %cst_15 = arith.constant 0xFF800000 : f32
      %24 = vector.broadcast %cst_15 : f32 to vector<8x1xf32>
      %c0_16 = arith.constant 0 : index
      %c0_17 = arith.constant 0 : index
      %25 = vector.load %arg5[%c0_16, %c0_17] : memref<8x1xf32, #tpu.memory_space<vmem>>, vector<8x1xf32>
      tpu.vector_store %arg5[%c0_16, %c0_17], %24 {strides = array<i32>} : memref<8x1xf32, #tpu.memory_space<vmem>>, vector<8x1xf32>,
      %cst_18 = arith.constant 0.000000e+00 : f32
      %26 = vector.broadcast %cst_18 : f32 to vector<8x1xf32>
      %c0_19 = arith.constant 0 : index
      %c0_20 = arith.constant 0 : index
      %27 = vector.load %arg6[%c0_19, %c0_20] : memref<8x1xf32, #tpu.memory_space<vmem>>, vector<8x1xf32>
      tpu.vector_store %arg6[%c0_19, %c0_20], %26 {strides = array<i32>} : memref<8x1xf32, #tpu.memory_space<vmem>>, vector<8x1xf32>,
    } else {
    }
    %c0 = arith.constant 0 : index
    %c0_1 = arith.constant 0 : index
    %3 = vector.load %arg2[%c0, %c0_1] : memref<8x32xf32, #tpu.memory_space<vmem>>, vector<8x32xf32>
    %c0_2 = arith.constant 0 : index
    %c0_3 = arith.constant 0 : index
    %4 = vector.load %arg5[%c0_2, %c0_3] : memref<8x1xf32, #tpu.memory_space<vmem>>, vector<8x1xf32>
    %cst = arith.constant dense<0xFF800000> : vector<8xf32>
    %5 = vector.multi_reduction <maximumf>, %3, %cst [1] : vector<8x32xf32> to vector<8xf32>
    %6 = vector.shape_cast %5 : vector<8xf32> to vector<8x1xf32>
    %7 = arith.maximumf %4, %6 : vector<8x1xf32>
    %c0_4 = arith.constant 0 : index
    %c0_5 = arith.constant 0 : index
    %8 = vector.load %arg5[%c0_4, %c0_5] : memref<8x1xf32, #tpu.memory_space<vmem>>, vector<8x1xf32>
    %9 = arith.subf %8, %7 : vector<8x1xf32>
    %10 = math.exp %9 : vector<8x1xf32>
    %c0_6 = arith.constant 0 : index
    %c0_7 = arith.constant 0 : index
    %11 = vector.load %arg6[%c0_6, %c0_7] : memref<8x1xf32, #tpu.memory_space<vmem>>, vector<8x1xf32>
    %12 = arith.mulf %10, %11 : vector<8x1xf32>
    %13 = vector.broadcast %7 : vector<8x1xf32> to vector<8x32xf32>
    %14 = arith.subf %3, %13 : vector<8x32xf32>
    %15 = math.exp %14 : vector<8x32xf32>
    %cst_8 = arith.constant dense<0.000000e+00> : vector<8xf32>
    %16 = vector.multi_reduction <add>, %15, %cst_8 [1] : vector<8x32xf32> to vector<8xf32>
    %17 = vector.shape_cast %16 : vector<8xf32> to vector<8x1xf32>
    %18 = arith.addf %12, %17 : vector<8x1xf32>
    %c0_9 = arith.constant 0 : index
    %c0_10 = arith.constant 0 : index
    %19 = vector.load %arg6[%c0_9, %c0_10] : memref<8x1xf32, #tpu.memory_space<vmem>>, vector<8x1xf32>
    tpu.vector_store %arg6[%c0_9, %c0_10], %18 {strides = array<i32>} : memref<8x1xf32, #tpu.memory_space<vmem>>, vector<8x1xf32>,
    %c0_11 = arith.constant 0 : index
    %c0_12 = arith.constant 0 : index
    %20 = vector.load %arg5[%c0_11, %c0_12] : memref<8x1xf32, #tpu.memory_space<vmem>>, vector<8x1xf32>
    tpu.vector_store %arg5[%c0_11, %c0_12], %7 {strides = array<i32>} : memref<8x1xf32, #tpu.memory_space<vmem>>, vector<8x1xf32>,
    %c0_i32_13 = arith.constant 0 : i32
    %21 = arith.cmpi eq, %arg1, %c0_i32_13 : i32
    %22 = arith.extui %21 : i1 to i32
    %c0_i32_14 = arith.constant 0 : i32
    %23 = arith.cmpi ne, %22, %c0_i32_14 : i32
    scf.if %23 {
      %c0_15 = arith.constant 0 : index
      %c0_16 = arith.constant 0 : index
      %24 = vector.load %arg6[%c0_15, %c0_16] : memref<8x1xf32, #tpu.memory_space<vmem>>, vector<8x1xf32>
      %25 = math.log %24 : vector<8x1xf32>
      %c0_17 = arith.constant 0 : index
      %c0_18 = arith.constant 0 : index
      %26 = vector.load %arg5[%c0_17, %c0_18] : memref<8x1xf32, #tpu.memory_space<vmem>>, vector<8x1xf32>
      %27 = arith.addf %25, %26 : vector<8x1xf32>
      %c0_19 = arith.constant 0 : index
      %c0_20 = arith.constant 0 : index
      %28 = vector.load %arg3[%c0_19, %c0_20] : memref<8x1xf32, #tpu.memory_space<vmem>>, vector<8x1xf32>
      %29 = arith.subf %27, %28 : vector<8x1xf32>
      %30 = vector.shape_cast %29 : vector<8x1xf32> to vector<1x8x1xf32>
      %cst_21 = arith.constant dense<0.000000e+00> : vector<1xf32>
      %31 = vector.multi_reduction <add>, %30, %cst_21 [1, 2] : vector<1x8x1xf32> to vector<1xf32>
      %32 = vector.shape_cast %31 : vector<1xf32> to vector<1x1x1xf32>
      %33 = vector.extract %32[0, 0, 0] : f32 from vector<1x1x1xf32>
      %34 = vector.broadcast %33 : f32 to vector<1x8x128xf32>
      %c0_22 = arith.constant 0 : index
      %c0_23 = arith.constant 0 : index
      %c0_24 = arith.constant 0 : index
      %35 = vector.load %arg4[%c0_22, %c0_23, %c0_24] : memref<1x8x128xf32, #tpu.memory_space<vmem>>, vector<1x8x128xf32>
      tpu.vector_store %arg4[%c0_22, %c0_23, %c0_24], %34 {strides = array<i32>} : memref<1x8x128xf32, #tpu.memory_space<vmem>>, vector<1x8x128xf32>,
    } else {
    }
    return
  }
  func.func @transform_0(%arg0: i32, %arg1: i32) -> (i32, i32) {
    %c0_i32 = arith.constant 0 : i32
    return %arg0, %arg1 : i32, i32
  }
  func.func @transform_1(%arg0: i32, %arg1: i32) -> (i32, i32) {
    %c0_i32 = arith.constant 0 : i32
    %c0_i32_0 = arith.constant 0 : i32
    return %arg0, %c0_i32 : i32, i32
  }
  func.func @transform_2(%arg0: i32, %arg1: i32) -> (i32, i32, i32) {
    %c0_i32 = arith.constant 0 : i32
    %c0_i32_0 = arith.constant 0 : i32
    %c0_i32_1 = arith.constant 0 : i32
    return %arg0, %c0_i32, %c0_i32_0 : i32, i32, i32
  }
}

</mosaic_0001>

<bundles_post_ra>
// kernel: tpu_custom_call.1
= control target key start
LH: loop header
LB: loop body
LE: loop exit
PB: predicated region body
PF: predicated region fallthrough
CT: control target
= control target key end

     0   :  { %vm21_vm0 = vcmask 261120   ;;  %s163_s0 = inlined_call_operand.vmem [shape: f32[8,32], index: 0, kind: input, shape index: {}]   ;;  %s164_s1 = inlined_call_operand.vmem [shape: f32[8,1], index: 1, kind: input, shape index: {}]   ;;  %s165_s2 = inlined_call_operand.hbm [shape: f32[1,8,128], index: 2, kind: output, shape index: {}]  }
   0x1   :  { %v19_v0 = vld [vmem:[%s163_s0] sm:$0xff] }
   0x2   :  { %7 = vsyncpa [#allocation5], 0  ;;  %v22_v1 = vsel %vm21_vm0, %v19_v0, -inf  ;;  %vm16_vm1 = vcmask 7168   ;;  %v119_v2 = vmov -inf   ;;  %v120_v3 = vmov 0  }
   0x3   :  { %23 = vmax.xlane.f32.xlu0 %v22_v1  ;;  %17 = vst.msk [vmem:[#allocation2] sm:$0xff] %vm16_vm1, %v119_v2  ;;  %v121_v4 = vmov 0.0   ;;  %v54_v24 = vld [vmem:[%s164_s1] sm:$0xff]  ;;  %s122_s12 = smov [#allocation4]  }
   0x4   :  { %88 = vset.pattern.permute.xlu0 %v120_v3  ;;  %18 = vst.msk [vmem:[#allocation3] sm:$0xff] %vm16_vm1, %v121_v4  ;;  %s74_s13 = sshll.u32 %s122_s12, 4  ;;  %s75_s13 = int_to_ptr.vmem [resolvable:$true] %s74_s13 }
   0x5   :  { %s95_s1 = scalar_lea.vmem %s75_s13, 128  ;;  %p100_p1 = scmp.lt.s32.totalorder %s75_s13, %s75_s13 }
   0x6   :  { %p96_p0 = scmp.ne.s32.totalorder %s75_s13, %s95_s1  ;;  %p101_p2 = scmp.lt.s32.totalorder %s95_s1, %s95_s1 }
   0x8   :  { %p102_p3 = por %p101_p2, %p100_p1 }
   0xa   :  { %v20_v5 = vld [vmem:[#allocation2] sm:$0xff]  ;;  %p103_p4 = pnand %p102_p3, %p96_p0 }
   0xb   :  { %v29_v16 = vld [vmem:[#allocation3] sm:$0xff] }
  0x90   :  { %v24_v6 = vpop.xlane.xlu0 %23 }
  0x91   :  { %v25_v7 = vmax.f32 %v20_v5, %v24_v6 }
  0x93   :  { %v26_v8 = vsub.f32 %v20_v5, %v25_v7  ;;  %45 = vst.msk [vmem:[#allocation2] sm:$0xff] %vm16_vm1, %v25_v7  ;;  %33 = vperm.xlu0 %88, %v25_v7  }
  0x95   :  { %v27_v14 = vmul.f32 1.442695, %v26_v8 }
  0x9a   :  { %v52_v23 = vld [vmem:[#allocation2] sm:$0xff] }
 0x112   :  { %v34_v9 = vpop.permute.xlu0 %33 }
 0x113   :  { %v36_v10 = vsub.f32 %v19_v0, %v34_v9 }
 0x115   :  { %v37_v11 = vmul.f32 1.442695, %v36_v10 }
 0x117   :  { %89 = vpow2.f32 %v37_v11 }
 0x118   :  { %91 = vpow2.f32 %v27_v14 }
 0x121   :  { %v90_v12 = vpop.eup %89 }
 0x122   :  { %v39_v13 = vsel %vm21_vm0, %v90_v12, 0.0  ;;  %v92_v15 = vpop.eup %91 }
 0x123   :  { %40 = vadd.xlane.f32.xlu1 %v39_v13  ;;  %v30_v17 = vmul.f32 %v92_v15, %v29_v16 }
 0x1b0   :  { %v41_v18 = vpop.xlane.xlu1 %40 }
 0x1b1   :  { %v42_v19 = vadd.f32 %v41_v18, %v30_v17 }
 0x1b3   :  { %44 = vst.msk [vmem:[#allocation3] sm:$0xff] %vm16_vm1, %v42_v19 }
 0x1ba   :  { %v49_v20 = vld [vmem:[#allocation3] sm:$0xff] }
 0x1bb   :  { %93 = vlog2.f32 %v49_v20 }
 0x1c5   :  { %v94_v21 = vpop.eup %93 }
 0x1c6   :  { %v51_v22 = vmul.f32 0.6931472, %v94_v21 }
 0x1c8   :  { %v53_v25 = vadd.f32 %v52_v23, %v51_v22 }
 0x1ca   :  { %v55_v26 = vsub.f32 %v53_v25, %v54_v24 }
 0x1cc   :  { %v56_v27 = vsel %vm16_vm1, %v55_v26, 0.0 }
 0x1cd   :  { %57 = vadd.xlane.f32.xlu1 %v56_v27 }
 0x25a   :  { %v58_v28 = vpop.xlane.xlu1 %57 }
 0x25b   :  { %v59_v29 = vrot.slane %v58_v28, 4 }
 0x25d   :  { %v60_v30 = vadd.f32 %v59_v29, %v58_v28 }
 0x25f   :  { %v61_v31 = vrot.slane %v60_v30, 2 }
 0x261   :  { %v62_v32 = vadd.f32 %v61_v31, %v60_v30 }
 0x263   :  { %v63_v33 = vrot.slane %v62_v32, 1 }
 0x265   :  { %v64_v34 = vadd.f32 %v63_v33, %v62_v32 }
 0x267   :  { %82 = vpush %v64_v34 }
 0x298   :  { %s83_s14 = spop %82 }
 0x299   :  { %v66_v35 = vstv %s83_s14 }
 0x29a   :  { %67 = vst [vmem:[#allocation4] sm:$0xff] %v66_v35 }
 0x29b   :  { %106 = shalt.err (!%p103_p4)
}
 0x29c   :  { %s107_s17 = scalar_lea.hbm %s165_s2, 128 }
 0x29d   :  { %p108_p5 = scmp.ne.s32.totalorder %s165_s2, %s107_s17  ;;  %p111_p6 = scmp.lt.u32.totalorder %s107_s17, %s165_s2 }
 0x29f   :  { %p113_p7 = pnand %p111_p6, %p108_p5 }
 0x2a1   :  { %116 = shalt.err (!%p113_p7)
}
 0x2a2   :  { %77 = dma.vmem_to_hbm [thread:$0]  %s75_s13, 128, %s165_s2, [#allocation5]  }
 0x2a3   :  { %117 = dma.done.wait [#allocation5], 128  }
 0x2a4   :  { %118 = vsyncadd [#allocation5], 4294967168 }
 0x2a5   :  { %81 = vsyncpa [#allocation5], 1 }

</bundles_post_ra>
